<compile_context>
chip_gen: v5e
topology: v5e:2x2
jax: 0.10.0
libtpu: 0.0.40
codegen_flags: <defaults>
</compile_context>

<pallas_src>
import math
import functools

import jax
import jax.numpy as jnp
from jax.experimental import pallas as pl
from jax.experimental.pallas import tpu as pltpu


def _round_up(x, m):
    return ((x + m - 1) // m) * m


# ------------------------- Pallas kernel -------------------------

def _patch_embed_kernel(p_ref, w_ref, b_ref, gm_ref, bt_ref, *rest, groups, eps):
    # p_ref : [R, g*K]    g tokens packed per row (im2col patches, exact K)
    # w_ref : [g*K, g*E]  block-diagonal projection weight ([K, E] when g == 1)
    # b_ref, gm_ref, bt_ref : [1, g*E] conv bias / LN gamma / LN beta (tiled g times)
    # m_ref : [g*E, g*E]  block-averaging matrix blockdiag(ones(E,E))/E (g > 1 only)
    # o_ref : [R, g*E]    lane-dense output (g*E is a multiple of 128 when g > 1)
    if groups == 1:
        (o_ref,) = rest
        m_ref = None
    else:
        m_ref, o_ref = rest

    y = jnp.dot(p_ref[...], w_ref[...], preferred_element_type=jnp.float32)
    y = y + b_ref[...]

    if groups == 1:
        # plain per-row LayerNorm over the (>=128-wide) embedding dim
        mean = jnp.mean(y, axis=-1, keepdims=True)
        d = y - mean
        var = jnp.mean(d * d, axis=-1, keepdims=True)
    else:
        # segmented LayerNorm: each row holds g tokens of E lanes each.  One MXU
        # pass per statistic via the block-averaging matrix keeps it lane-dense.
        mean = jnp.dot(y, m_ref[...], preferred_element_type=jnp.float32)
        d = y - mean
        var = jnp.dot(d * d, m_ref[...], preferred_element_type=jnp.float32)

    y_n = d * jax.lax.rsqrt(var + eps)
    o_ref[...] = (y_n * gm_ref[...] + bt_ref[...]).astype(o_ref.dtype)


def _proj_layernorm(patches, w_t, bias, gamma, beta, out_dtype):
    """patches: [N, K] (compute dtype), w_t: [K, E] -> [N, E] = LN(patches @ w_t + bias)."""
    N, K = patches.shape
    E = w_t.shape[1]
    f32 = jnp.float32
    in_b = jnp.dtype(patches.dtype).itemsize
    out_b = jnp.dtype(out_dtype).itemsize

    # lane-dense grouping: pack g tokens per output row -> 128-lane stores for E < 128
    g = 128 // E if (E < 128 and 128 % E == 0) else 1
    sub = max(8, 32 // in_b)                    # sublane tile: 8 (f32) / 16 (bf16)
    quantum = sub * g                           # token granularity

    # minimal row alignment (usually a no-op for real workloads; fused by XLA)
    N_al = _round_up(max(N, quantum), quantum)
    if N_al != N:
        patches = jnp.pad(patches, ((0, N_al - N), (0, 0)))
    rows = N_al // g
    p = patches.reshape(rows, g * K)            # contiguous: pack g tokens per row

    # grid-invariant operands.
    # TODO(synk): in a full model these are per-layer constants and should be
    # prepared once at init instead of per forward call (they are tiny).
    if g > 1:
        w_in = jnp.kron(jnp.eye(g, dtype=w_t.dtype), w_t)              # [g*K, g*E]
        m_avg = jnp.kron(jnp.eye(g, dtype=f32),
                         jnp.full((E, E), 1.0 / E, dtype=f32))          # [g*E, g*E]
    else:
        w_in, m_avg = w_t, None
    b_t = jnp.tile(bias.astype(f32).reshape(1, E), (1, g))              # [1, g*E]
    gm_t = jnp.tile(gamma.astype(f32).reshape(1, E), (1, g))
    bt_t = jnp.tile(beta.astype(f32).reshape(1, E), (1, g))

    # token tile: as large as the VMEM budget allows (per-step overhead ~0.35us),
    # capped so the grid keeps >= 2 steps when possible (v7x has 2 TensorCores).
    TM_MAX = 2048
    const_bytes = (w_in.size * in_b + 3 * g * E * 4
                   + (m_avg.size * 4 if m_avg is not None else 0))
    per_token = 2 * K * in_b + 2 * E * out_b            # double-buffered in + out
    budget = 26 << 20
    tm = max(quantum, ((budget - 2 * const_bytes) // per_token) // quantum * quantum)
    tm = min(tm, TM_MAX, N_al)
    if N_al >= 2 * quantum:
        tm = min(tm, _round_up(-(-N_al // 2), quantum))
    R = tm // g
    grid = (pl.cdiv(rows, R),)

    vmem_est = 2 * R * g * K * in_b + 2 * R * g * E * out_b + 2 * const_bytes + (6 << 20)
    vmem_limit = int(min(max(vmem_est, 16 << 20), 64 << 20))

    resident = dict(pipeline_mode=pl.Buffered(1))       # fetched once, single buffer
    in_specs = [
        pl.BlockSpec((R, g * K), lambda i: (i, 0)),                     # patches tile
        pl.BlockSpec((g * K, g * E), lambda i: (0, 0), **resident),     # weight
        pl.BlockSpec((1, g * E), lambda i: (0, 0), **resident),         # conv bias
        pl.BlockSpec((1, g * E), lambda i: (0, 0), **resident),         # ln gamma
        pl.BlockSpec((1, g * E), lambda i: (0, 0), **resident),         # ln beta
    ]
    operands = [p, w_in, b_t, gm_t, bt_t]
    if g > 1:
        in_specs.append(pl.BlockSpec((g * E, g * E), lambda i: (0, 0), **resident))
        operands.append(m_avg)

    kernel = functools.partial(_patch_embed_kernel, groups=g, eps=1e-5)

    out = pl.pallas_call(
        kernel,
        out_shape=jax.ShapeDtypeStruct((rows, g * E), out_dtype),
        grid_spec=pltpu.PrefetchScalarGridSpec(
            num_scalar_prefetch=0,
            grid=grid,
            in_specs=in_specs,
            out_specs=pl.BlockSpec((R, g * E), lambda i: (i, 0)),
        ),
        compiler_params=pltpu.CompilerParams(
            dimension_semantics=("parallel",),
            vmem_limit_bytes=vmem_limit),
    )(*operands)

    # contiguous reshape back to one token per row, drop alignment rows
    return out.reshape(N_al, E)[:N]


# ------------------------- Module wrapper -------------------------

def init_overlap_patch_embed_params(key, *, patch_size, in_chans, embed_dim):
    """Deterministic init matching the PyTorch module's _init_weights."""
    fan_out = patch_size * patch_size * embed_dim        # conv groups == 1
    std = math.sqrt(2.0 / fan_out)
    conv_w = std * jax.random.normal(
        key, (embed_dim, in_chans, patch_size, patch_size), dtype=jnp.float32)
    conv_b = jnp.zeros((embed_dim,), dtype=jnp.float32)
    ln_w = jnp.ones((embed_dim,), dtype=jnp.float32)
    ln_b = jnp.zeros((embed_dim,), dtype=jnp.float32)
    return dict(conv_w=conv_w, conv_b=conv_b, ln_w=ln_w, ln_b=ln_b)


@functools.partial(jax.jit, static_argnames=("patch_size", "stride", "compute_dtype"))
def overlap_patch_embed(x, params, *, patch_size=7, stride=4,
                        compute_dtype=jnp.bfloat16):
    """Forward pass of OverlapPatchEmbed. x: [B, C, H, W] (NCHW)."""
    B, C, H, W = x.shape
    E = params["conv_w"].shape[0]
    pad = patch_size // 2
    Ho = (H + 2 * pad - patch_size) // stride + 1
    Wo = (W + 2 * pad - patch_size) // stride + 1
    K = C * patch_size * patch_size

    # Single-pass im2col producer: NHWC + cast to the compute dtype, strided
    # slices stacked straight into [B*L, K] (K ordered (ki, kj, c)).  No
    # major-axis transpose of the expanded array and no K padding in HBM.
    xt = jnp.transpose(x, (0, 2, 3, 1)).astype(compute_dtype)        # [B, H, W, C]
    xp = jnp.pad(xt, ((0, 0), (pad, pad), (pad, pad), (0, 0)))
    cols = [xp[:, i:i + stride * Ho:stride, j:j + stride * Wo:stride, :]
            for i in range(patch_size) for j in range(patch_size)]
    patches = jnp.stack(cols, axis=3)                                 # [B, Ho, Wo, kh*kw, C]
    patches = patches.reshape(B * Ho * Wo, K)

    # conv weight with rows permuted to the (ki, kj, c) patch ordering
    w_t = jnp.transpose(params["conv_w"], (2, 3, 1, 0)).reshape(K, E)
    w_t = w_t.astype(compute_dtype)

    out = _proj_layernorm(patches, w_t, params["conv_b"], params["ln_w"],
                          params["ln_b"], out_dtype=x.dtype)
    return out.reshape(B, Ho * Wo, E), Ho, Wo


# ------------------------- Reference (plain JAX) -------------------------

def overlap_patch_embed_ref(x, params, *, patch_size=7, stride=4):
    pad = patch_size // 2
    y = jax.lax.conv_general_dilated(
        x, params["conv_w"],
        window_strides=(stride, stride),
        padding=((pad, pad), (pad, pad)),
        dimension_numbers=("NCHW", "OIHW", "NCHW"))
    y = y + params["conv_b"][None, :, None, None]
    B, E, Ho, Wo = y.shape
    y = y.reshape(B, E, Ho * Wo).transpose(0, 2, 1)          # [B, L, E]
    mean = jnp.mean(y, axis=-1, keepdims=True)
    var = jnp.mean((y - mean) ** 2, axis=-1, keepdims=True)
    y = (y - mean) * jax.lax.rsqrt(var + 1e-5)
    y = y * params["ln_w"] + params["ln_b"]
    return y, Ho, Wo


# ------------------------- Main -------------------------

if __name__ == "__main__":
    key = jax.random.PRNGKey(0)
    k_x, k_p = jax.random.split(key)

    B, C, Himg, Wimg = 2, 4, 16, 16
    patch_size, stride, embed_dim = 7, 4, 32

    x = jax.random.normal(k_x, (B, C, Himg, Wimg), dtype=jnp.float32)
    params = init_overlap_patch_embed_params(
        k_p, patch_size=patch_size, in_chans=C, embed_dim=embed_dim)

    ref, Hr, Wr = overlap_patch_embed_ref(x, params, patch_size=patch_size, stride=stride)

    # default path: bf16 input streams, f32 accumulation (relaxed tolerance)
    out, H, W = overlap_patch_embed(x, params, patch_size=patch_size, stride=stride)
    out = jax.block_until_ready(out)
    assert (int(H), int(W)) == (int(Hr), int(Wr))
    assert out.shape == ref.shape == (B, int(Hr) * int(Wr), embed_dim)
    err_bf16 = float(jnp.max(jnp.abs(out - ref)))
    assert jnp.allclose(out, ref, atol=3e-2, rtol=3e-2), err_bf16

    # f32 compute path: tight numerical check of the kernel math
    out32, _, _ = overlap_patch_embed(x, params, patch_size=patch_size, stride=stride,
                                      compute_dtype=jnp.float32)
    out32 = jax.block_until_ready(out32)
    err_f32 = float(jnp.max(jnp.abs(out32 - ref)))
    assert jnp.allclose(out32, ref, atol=2e-4, rtol=2e-4), err_f32

    print("KERNEL_OK")
</pallas_src>

<mosaic_0001>
module attributes {stable_mosaic.version = 11 : i64} {
  func.func @_patch_embed_kernel(%arg0: i32, %arg1: memref<16x784xbf16, #tpu.memory_space<vmem>>, %arg2: memref<784x128xbf16, #tpu.memory_space<vmem>>, %arg3: memref<1x128xf32, #tpu.memory_space<vmem>>, %arg4: memref<1x128xf32, #tpu.memory_space<vmem>>, %arg5: memref<1x128xf32, #tpu.memory_space<vmem>>, %arg6: memref<128x128xf32, #tpu.memory_space<vmem>>, %arg7: memref<16x128xf32, #tpu.memory_space<vmem>>) attributes {dimension_semantics = [#tpu.dimension_semantics<parallel>], iteration_bounds = array<i64: 1>, scalar_prefetch = 0 : i64, scratch_operands = 0 : i64, tpu.core_type = #tpu.core_type<tc>, window_params = [{transform_indices = @transform_0, window_bounds = array<i64: 16, 784>}, {pipeline_mode = #tpu.pipeline_mode<synchronous>, transform_indices = @transform_1, window_bounds = array<i64: 784, 128>}, {pipeline_mode = #tpu.pipeline_mode<synchronous>, transform_indices = @transform_2, window_bounds = array<i64: 1, 128>}, {pipeline_mode = #tpu.pipeline_mode<synchronous>, transform_indices = @transform_3, window_bounds = array<i64: 1, 128>}, {pipeline_mode = #tpu.pipeline_mode<synchronous>, transform_indices = @transform_4, window_bounds = array<i64: 1, 128>}, {pipeline_mode = #tpu.pipeline_mode<synchronous>, transform_indices = @transform_5, window_bounds = array<i64: 128, 128>}, {transform_indices = @transform_6, window_bounds = array<i64: 16, 128>}]} {
    %c0 = arith.constant 0 : index
    %c0_0 = arith.constant 0 : index
    %0 = vector.load %arg1[%c0, %c0_0] : memref<16x784xbf16, #tpu.memory_space<vmem>>, vector<16x784xbf16>
    %c0_1 = arith.constant 0 : index
    %c0_2 = arith.constant 0 : index
    %1 = vector.load %arg2[%c0_1, %c0_2] : memref<784x128xbf16, #tpu.memory_space<vmem>>, vector<784x128xbf16>
    %cst = arith.constant dense<0.000000e+00> : vector<16x128xf32>
    %2 = tpu.matmul %0, %1, %cst {dimension_numbers = #tpu.dot_dimension_numbers<[1], [0], [0], [1], [0, 0, 1, 1], [], []>} : vector<16x784xbf16>, vector<784x128xbf16>, vector<16x128xf32> -> vector<16x128xf32>
    %c0_3 = arith.constant 0 : index
    %c0_4 = arith.constant 0 : index
    %3 = vector.load %arg3[%c0_3, %c0_4] : memref<1x128xf32, #tpu.memory_space<vmem>>, vector<1x128xf32>
    %4 = vector.broadcast %3 : vector<1x128xf32> to vector<16x128xf32>
    %5 = arith.addf %2, %4 : vector<16x128xf32>
    %c0_5 = arith.constant 0 : index
    %c0_6 = arith.constant 0 : index
    %6 = vector.load %arg6[%c0_5, %c0_6] : memref<128x128xf32, #tpu.memory_space<vmem>>, vector<128x128xf32>
    %cst_7 = arith.constant dense<0.000000e+00> : vector<16x128xf32>
    %7 = tpu.matmul %5, %6, %cst_7 {dimension_numbers = #tpu.dot_dimension_numbers<[1], [0], [0], [1], [0, 0, 1, 1], [], []>} : vector<16x128xf32>, vector<128x128xf32>, vector<16x128xf32> -> vector<16x128xf32>
    %8 = arith.subf %5, %7 : vector<16x128xf32>
    %9 = arith.mulf %8, %8 : vector<16x128xf32>
    %c0_8 = arith.constant 0 : index
    %c0_9 = arith.constant 0 : index
    %10 = vector.load %arg6[%c0_8, %c0_9] : memref<128x128xf32, #tpu.memory_space<vmem>>, vector<128x128xf32>
    %cst_10 = arith.constant dense<0.000000e+00> : vector<16x128xf32>
    %11 = tpu.matmul %9, %10, %cst_10 {dimension_numbers = #tpu.dot_dimension_numbers<[1], [0], [0], [1], [0, 0, 1, 1], [], []>} : vector<16x128xf32>, vector<128x128xf32>, vector<16x128xf32> -> vector<16x128xf32>
    %cst_11 = arith.constant 9.99999974E-6 : f32
    %12 = vector.broadcast %cst_11 : f32 to vector<16x128xf32>
    %13 = arith.addf %11, %12 : vector<16x128xf32>
    %14 = math.rsqrt %13 : vector<16x128xf32>
    %15 = arith.mulf %8, %14 : vector<16x128xf32>
    %c0_12 = arith.constant 0 : index
    %c0_13 = arith.constant 0 : index
    %16 = vector.load %arg4[%c0_12, %c0_13] : memref<1x128xf32, #tpu.memory_space<vmem>>, vector<1x128xf32>
    %17 = vector.broadcast %16 : vector<1x128xf32> to vector<16x128xf32>
    %18 = arith.mulf %15, %17 : vector<16x128xf32>
    %c0_14 = arith.constant 0 : index
    %c0_15 = arith.constant 0 : index
    %19 = vector.load %arg5[%c0_14, %c0_15] : memref<1x128xf32, #tpu.memory_space<vmem>>, vector<1x128xf32>
    %20 = vector.broadcast %19 : vector<1x128xf32> to vector<16x128xf32>
    %21 = arith.addf %18, %20 : vector<16x128xf32>
    %c0_16 = arith.constant 0 : index
    %c0_17 = arith.constant 0 : index
    %22 = vector.load %arg7[%c0_16, %c0_17] : memref<16x128xf32, #tpu.memory_space<vmem>>, vector<16x128xf32>
    tpu.vector_store %arg7[%c0_16, %c0_17], %21 {strides = array<i32>} : memref<16x128xf32, #tpu.memory_space<vmem>>, vector<16x128xf32>,
    return
  }
  func.func @transform_0(%arg0: i32) -> (i32, i32) {
    %c0_i32 = arith.constant 0 : i32
    %c0_i32_0 = arith.constant 0 : i32
    return %arg0, %c0_i32 : i32, i32
  }
  func.func @transform_1(%arg0: i32) -> (i32, i32) {
    %c0_i32 = arith.constant 0 : i32
    %c0_i32_0 = arith.constant 0 : i32
    %c0_i32_1 = arith.constant 0 : i32
    return %c0_i32, %c0_i32_0 : i32, i32
  }
  func.func @transform_2(%arg0: i32) -> (i32, i32) {
    %c0_i32 = arith.constant 0 : i32
    %c0_i32_0 = arith.constant 0 : i32
    %c0_i32_1 = arith.constant 0 : i32
    return %c0_i32, %c0_i32_0 : i32, i32
  }
  func.func @transform_3(%arg0: i32) -> (i32, i32) {
    %c0_i32 = arith.constant 0 : i32
    %c0_i32_0 = arith.constant 0 : i32
    %c0_i32_1 = arith.constant 0 : i32
    return %c0_i32, %c0_i32_0 : i32, i32
  }
  func.func @transform_4(%arg0: i32) -> (i32, i32) {
    %c0_i32 = arith.constant 0 : i32
    %c0_i32_0 = arith.constant 0 : i32
    %c0_i32_1 = arith.constant 0 : i32
    return %c0_i32, %c0_i32_0 : i32, i32
  }
  func.func @transform_5(%arg0: i32) -> (i32, i32) {
    %c0_i32 = arith.constant 0 : i32
    %c0_i32_0 = arith.constant 0 : i32
    %c0_i32_1 = arith.constant 0 : i32
    return %c0_i32, %c0_i32_0 : i32, i32
  }
  func.func @transform_6(%arg0: i32) -> (i32, i32) {
    %c0_i32 = arith.constant 0 : i32
    %c0_i32_0 = arith.constant 0 : i32
    return %arg0, %c0_i32 : i32, i32
  }
}

</mosaic_0001>

<bundles_post_ra>
// kernel: overlap_patch_embed.1
= control target key start
LH: loop header
LB: loop body
LE: loop exit
PB: predicated region body
PF: predicated region fallthrough
CT: control target
= control target key end

     0   :  { %vm463_vm0 = vcmask 130048   ;;  %s1246_s1 = inlined_call_operand.vmem [shape: bf16[784,128], index: 1, kind: input, shape index: {}]   ;;  %s1247_s2 = inlined_call_operand.vmem [shape: f32[1,128], index: 2, kind: input, shape index: {}]   ;;  %s1248_s0 = inlined_call_operand.vmem [shape: bf16[16,784], index: 0, kind: input, shape index: {}]   ;;  %s1249_s5 = inlined_call_operand.vmem [shape: f32[128,128], index: 5, kind: input, shape index: {}]   ;;  %s1250_s3 = inlined_call_operand.vmem [shape: f32[1,128], index: 3, kind: input, shape index: {}]   ;;  %s1251_s4 = inlined_call_operand.vmem [shape: f32[1,128], index: 4, kind: input, shape index: {}]   ;;  %s1252_s6 = inlined_call_operand.vmem [shape: f32[16,128], index: 6, kind: output, shape index: {}]  }
   0x1   :  { %v910_v0 = vld [vmem:[%s1246_s1 + $0x38] sm:$0xff]  ;;  %v909_v4 = vld [vmem:[%s1246_s1 + $0x30] sm:$0xff]  ;;  %v908_v8 = vld [vmem:[%s1246_s1 + $0x28] sm:$0xff] }
   0x2   :  { %v918_v1 = vld [vmem:[%s1246_s1 + $0x78] sm:$0xff]  ;;  %467 = vmatpush.bf16.msra.mxu0 %v910_v0  ;;  %v917_v5 = vld [vmem:[%s1246_s1 + $0x70] sm:$0xff]  ;;  %v916_v9 = vld [vmem:[%s1246_s1 + $0x68] sm:$0xff] }
   0x3   :  { %v926_v2 = vld [vmem:[%s1246_s1 + $0xb8] sm:$0xff]  ;;  %481 = vmatpush.bf16.msra.mxu1 %v918_v1  ;;  %v925_v6 = vld [vmem:[%s1246_s1 + $0xb0] sm:$0xff]  ;;  %v924_v10 = vld [vmem:[%s1246_s1 + $0xa8] sm:$0xff] }
   0x4   :  { %v934_v3 = vld [vmem:[%s1246_s1 + $0xf8] sm:$0xff]  ;;  %495 = vmatpush.bf16.msra.mxu2 %v926_v2  ;;  %v933_v7 = vld [vmem:[%s1246_s1 + $0xf0] sm:$0xff]  ;;  %v932_v11 = vld [vmem:[%s1246_s1 + $0xe8] sm:$0xff] }
   0x5   :  { %509 = vmatpush.bf16.msra.mxu3 %v934_v3  ;;  %v907_v12 = vld [vmem:[%s1246_s1 + $0x20] sm:$0xff]  ;;  %v906_v16 = vld [vmem:[%s1246_s1 + $0x18] sm:$0xff]  ;;  %v905_v20 = vld [vmem:[%s1246_s1 + $0x10] sm:$0xff] }
   0x6   :  { %468 = vmatpush.bf16.msra.mxu0 %v909_v4  ;;  %v915_v13 = vld [vmem:[%s1246_s1 + $0x60] sm:$0xff]  ;;  %v914_v17 = vld [vmem:[%s1246_s1 + $0x58] sm:$0xff]  ;;  %v913_v21 = vld [vmem:[%s1246_s1 + $0x50] sm:$0xff] }
   0x7   :  { %482 = vmatpush.bf16.msra.mxu1 %v917_v5  ;;  %v923_v14 = vld [vmem:[%s1246_s1 + $0xa0] sm:$0xff]  ;;  %v922_v18 = vld [vmem:[%s1246_s1 + $0x98] sm:$0xff]  ;;  %v921_v22 = vld [vmem:[%s1246_s1 + $0x90] sm:$0xff] }
   0x8   :  { %496 = vmatpush.bf16.msra.mxu2 %v925_v6  ;;  %v931_v15 = vld [vmem:[%s1246_s1 + $0xe0] sm:$0xff]  ;;  %v930_v19 = vld [vmem:[%s1246_s1 + $0xd8] sm:$0xff]  ;;  %v929_v23 = vld [vmem:[%s1246_s1 + $0xd0] sm:$0xff] }
   0x9   :  { %510 = vmatpush.bf16.msra.mxu3 %v933_v7  ;;  %v904_v24 = vld [vmem:[%s1246_s1 + $0x8] sm:$0xff]  ;;  %v903_v28 = vld [vmem:[%s1246_s1] sm:$0xff]  ;;  %v899_v31 = vld [vmem:[%s1248_s0 + $0x18] sm:$0xf0] }
   0xa   :  { %469 = vmatpush.bf16.msra.mxu0 %v908_v8  ;;  %v912_v25 = vld [vmem:[%s1246_s1 + $0x48] sm:$0xff]  ;;  %v911_v29 = vld [vmem:[%s1246_s1 + $0x40] sm:$0xff]  ;;  %v942_v34 = vld [vmem:[%s1246_s1 + $0x138] sm:$0xff] }
   0xb   :  { %483 = vmatpush.bf16.msra.mxu1 %v916_v9  ;;  %v920_v26 = vld [vmem:[%s1246_s1 + $0x88] sm:$0xff]  ;;  %v673_v30 = vld [vmem:[%s1248_s0] sm:$0xf]  ;;  %v896_v32 = vld [vmem:[%s1248_s0 + $0x4] sm:$0xf] }
   0xc   :  { %497 = vmatpush.bf16.msra.mxu2 %v924_v10  ;;  %v928_v27 = vld [vmem:[%s1246_s1 + $0xc8] sm:$0xff]  ;;  %v675_v33 = vld [vmem:[%s1248_s0 + $0x1c] sm:$0xf0]  ;;  %v950_v35 = vld [vmem:[%s1246_s1 + $0x178] sm:$0xff]  ;;  %v674_v40 = vor.u32 %v899_v31, %v673_v30 }
   0xd   :  { %511 = vmatpush.bf16.msra.mxu3 %v932_v11  ;;  %v919_v36 = vld [vmem:[%s1246_s1 + $0x80] sm:$0xff]  ;;  %v681_v38 = vld [vmem:[%s1248_s0 + $0x8] sm:$0xf]  ;;  %v897_v41 = vld [vmem:[%s1248_s0 + $0xc] sm:$0xf]  ;;  %v678_v43 = vor.u32 %v896_v32, %v675_v33 }
   0xe   :  { %470 = vmatpush.bf16.msra.mxu0 %v907_v12  ;;  %v927_v37 = vld [vmem:[%s1246_s1 + $0xc0] sm:$0xff]  ;;  %v683_v42 = vld [vmem:[%s1248_s0 + $0x24] sm:$0xf0]  ;;  %v941_v45 = vld [vmem:[%s1246_s1 + $0x130] sm:$0xff] }
   0xf   :  { %484 = vmatpush.bf16.msra.mxu1 %v915_v13  ;;  %v900_v39 = vld [vmem:[%s1248_s0 + $0x20] sm:$0xf0]  ;;  %v949_v46 = vld [vmem:[%s1246_s1 + $0x170] sm:$0xff]  ;;  %v686_v48 = vor.u32 %v897_v41, %v683_v42  ;;  %v940_v49 = vld [vmem:[%s1246_s1 + $0x128] sm:$0xff] }
  0x10   :  { %498 = vmatpush.bf16.msra.mxu2 %v923_v14  ;;  %v951_v44 = vld [vmem:[%s1246_s1 + $0x180] sm:$0xff]  ;;  %v682_v47 = vor.u32 %v900_v39, %v681_v38  ;;  %v948_v50 = vld [vmem:[%s1246_s1 + $0x168] sm:$0xff]  ;;  %v938_v53 = vld [vmem:[%s1246_s1 + $0x118] sm:$0xff] }
  0x11   :  { %512 = vmatpush.bf16.msra.mxu3 %v931_v15  ;;  %v939_v51 = vld [vmem:[%s1246_s1 + $0x120] sm:$0xff]  ;;  %v946_v54 = vld [vmem:[%s1246_s1 + $0x158] sm:$0xff]  ;;  %v902_v56 = vld [vmem:[%s1248_s0 + $0x30] sm:$0xf0] }
  0x12   :  { %471 = vmatpush.bf16.msra.mxu0 %v906_v16  ;;  %v947_v52 = vld [vmem:[%s1246_s1 + $0x160] sm:$0xff]  ;;  %v697_v55 = vld [vmem:[%s1248_s0 + $0x18] sm:$0xf]  ;;  %v937_v57 = vld [vmem:[%s1246_s1 + $0x110] sm:$0xff] }
  0x13   :  { %485 = vmatpush.bf16.msra.mxu1 %v914_v17  ;;  %v945_v58 = vld [vmem:[%s1246_s1 + $0x150] sm:$0xff]  ;;  %v698_v59 = vor.u32 %v902_v56, %v697_v55  ;;  %v936_v60 = vld [vmem:[%s1246_s1 + $0x108] sm:$0xff]  ;;  %v935_v62 = vld [vmem:[%s1246_s1 + $0x100] sm:$0xff] }
  0x14   :  { %499 = vmatpush.bf16.msra.mxu2 %v922_v18  ;;  %v944_v61 = vld [vmem:[%s1246_s1 + $0x148] sm:$0xff]  ;;  %v943_v63 = vld [vmem:[%s1246_s1 + $0x140] sm:$0xff]  ;;  %v689_v0 = vld [vmem:[%s1248_s0 + $0x10] sm:$0xf] }
  0x15   :  { %513 = vmatpush.bf16.msra.mxu3 %v930_v19  ;;  %v901_v1 = vld [vmem:[%s1248_s0 + $0x28] sm:$0xf0]  ;;  %v898_v2 = vld [vmem:[%s1248_s0 + $0x14] sm:$0xf]  ;;  %v691_v3 = vld [vmem:[%s1248_s0 + $0x2c] sm:$0xf0] }
  0x16   :  { %472 = vmatpush.bf16.msra.mxu0 %v905_v20  ;;  %v690_v4 = vor.u32 %v901_v1, %v689_v0  ;;  %v694_v5 = vor.u32 %v898_v2, %v691_v3  ;;  %v580_v6 = vld [vmem:[%s1249_s5 + $0x78] sm:$0xff]  ;;  %v579_v7 = vld [vmem:[%s1249_s5 + $0x70] sm:$0xff]  ;;  %v578_v8 = vld [vmem:[%s1249_s5 + $0x68] sm:$0xff] }
  0x17   :  { %486 = vmatpush.bf16.msra.mxu1 %v913_v21  ;;  %v577_v9 = vld [vmem:[%s1249_s5 + $0x60] sm:$0xff]  ;;  %v576_v10 = vld [vmem:[%s1249_s5 + $0x58] sm:$0xff]  ;;  %v575_v11 = vld [vmem:[%s1249_s5 + $0x50] sm:$0xff] }
  0x18   :  { %500 = vmatpush.bf16.msra.mxu2 %v921_v22  ;;  %v574_v12 = vld [vmem:[%s1249_s5 + $0x48] sm:$0xff]  ;;  %v573_v13 = vld [vmem:[%s1249_s5 + $0x40] sm:$0xff]  ;;  %v572_v14 = vld [vmem:[%s1249_s5 + $0x38] sm:$0xff] }
  0x19   :  { %514 = vmatpush.bf16.msra.mxu3 %v929_v23  ;;  %v571_v15 = vld [vmem:[%s1249_s5 + $0x30] sm:$0xff]  ;;  %v570_v16 = vld [vmem:[%s1249_s5 + $0x28] sm:$0xff]  ;;  %v569_v17 = vld [vmem:[%s1249_s5 + $0x20] sm:$0xff] }
  0x1a   :  { %473 = vmatpush.bf16.msra.mxu0 %v904_v24  ;;  %v568_v18 = vld [vmem:[%s1249_s5 + $0x18] sm:$0xff]  ;;  %v567_v19 = vld [vmem:[%s1249_s5 + $0x10] sm:$0xff]  ;;  %v566_v20 = vld [vmem:[%s1249_s5 + $0x8] sm:$0xff] }
  0x1b   :  { %487 = vmatpush.bf16.msra.mxu1 %v912_v25  ;;  %v565_v21 = vld [vmem:[%s1249_s5] sm:$0xff] }
  0x1c   :  { %501 = vmatpush.bf16.msra.mxu2 %v920_v26  ;;  %v952_v25 = vld [vmem:[%s1247_s2] ss:$0 sm:$0xff] }
  0x1d   :  { %515 = vmatpush.bf16.msra.mxu3 %v928_v27 }
  0x1e   :  { %474 = vmatpush.bf16.msra.mxu0 %v903_v28 }
  0x1f   :  { %488 = vmatpush.bf16.msra.mxu1 %v911_v29 }
  0x20   :  { %502 = vmatpush.bf16.msra.mxu2 %v919_v36 }
  0x21   :  { %516 = vmatpush.bf16.msra.mxu3 %v927_v37  ;;  %475 = vmatmul.bf16.vlgmr.msra.gmra.mxu0 %v674_v40 }
  0x22   :  { %523 = vmatpush.bf16.msrb.mxu0 %v942_v34  ;;  %489 = vmatmul.bf16.vlgmr.msra.gmra.mxu1 %v678_v43 }
  0x23   :  { %537 = vmatpush.bf16.msrb.mxu1 %v950_v35  ;;  %503 = vmatmul.bf16.vlgmr.msra.gmra.mxu2 %v682_v47 }
  0x24   :  { %558 = vmatpush.bf16.msrb.mxu2 %v951_v44  ;;  %517 = vmatmul.bf16.vlgmr.msra.gmra.mxu3 %v686_v48 }
  0x25   :  { %581 = vmatpush.msrb.mxu3 %v580_v6 }
  0x26   :  { %524 = vmatpush.bf16.msrb.mxu0 %v941_v45 }
  0x27   :  { %538 = vmatpush.bf16.msrb.mxu1 %v949_v46  ;;  %582 = vmatpush.msrb.mxu3 %v579_v7 }
  0x28   :  { %608 = vmatpush.msra.mxu2 %v580_v6 }
  0x29   :  { %583 = vmatpush.msrb.mxu3 %v578_v8 }
  0x2a   :  { %525 = vmatpush.bf16.msrb.mxu0 %v940_v49  ;;  %609 = vmatpush.msra.mxu2 %v579_v7 }
  0x2b   :  { %539 = vmatpush.bf16.msrb.mxu1 %v948_v50  ;;  %584 = vmatpush.msrb.mxu3 %v577_v9 }
  0x2c   :  { %610 = vmatpush.msra.mxu2 %v578_v8 }
  0x2d   :  { %585 = vmatpush.msrb.mxu3 %v576_v10 }
  0x2e   :  { %526 = vmatpush.bf16.msrb.mxu0 %v939_v51  ;;  %611 = vmatpush.msra.mxu2 %v577_v9  ;;  %v954_v9 = vld [vmem:[%s1251_s4] ss:$0 sm:$0xff] }
  0x2f   :  { %540 = vmatpush.bf16.msrb.mxu1 %v947_v52  ;;  %586 = vmatpush.msrb.mxu3 %v575_v11 }
  0x30   :  { %612 = vmatpush.msra.mxu2 %v576_v10 }
  0x31   :  { %587 = vmatpush.msrb.mxu3 %v574_v12 }
  0x32   :  { %527 = vmatpush.bf16.msrb.mxu0 %v938_v53  ;;  %613 = vmatpush.msra.mxu2 %v575_v11 }
  0x33   :  { %541 = vmatpush.bf16.msrb.mxu1 %v946_v54  ;;  %895 = vmatmul.msk.bf16.vlgmr.msrb.gmra.mxu2 %vm463_vm0, %v698_v59 }
  0x34   :  { %614 = vmatpush.msra.mxu2 %v574_v12  ;;  %588 = vmatpush.msrb.mxu3 %v573_v13 }
  0x36   :  { %528 = vmatpush.bf16.msrb.mxu0 %v937_v57  ;;  %615 = vmatpush.msra.mxu2 %v573_v13 }
  0x37   :  { %542 = vmatpush.bf16.msrb.mxu1 %v945_v58  ;;  %589 = vmatpush.msrb.mxu3 %v572_v14 }
  0x38   :  { %616 = vmatpush.msra.mxu2 %v572_v14 }
  0x39   :  { %590 = vmatpush.msrb.mxu3 %v571_v15 }
  0x3a   :  { %529 = vmatpush.bf16.msrb.mxu0 %v936_v60  ;;  %617 = vmatpush.msra.mxu2 %v571_v15 }
  0x3b   :  { %543 = vmatpush.bf16.msrb.mxu1 %v944_v61  ;;  %591 = vmatpush.msrb.mxu3 %v570_v16 }
  0x3c   :  { %618 = vmatpush.msra.mxu2 %v570_v16 }
  0x3d   :  { %592 = vmatpush.msrb.mxu3 %v569_v17 }
  0x3e   :  { %530 = vmatpush.bf16.msrb.mxu0 %v935_v62  ;;  %619 = vmatpush.msra.mxu2 %v569_v17 }
  0x3f   :  { %544 = vmatpush.bf16.msrb.mxu1 %v943_v63  ;;  %593 = vmatpush.msrb.mxu3 %v568_v18 }
  0x40   :  { %620 = vmatpush.msra.mxu2 %v568_v18 }
  0x41   :  { %531 = vmatmul.bf16.vlgmr.msrb.gmra.mxu0 %v690_v4  ;;  %594 = vmatpush.msrb.mxu3 %v567_v19 }
  0x42   :  { %545 = vmatmul.bf16.vlgmr.msrb.gmra.mxu1 %v694_v5  ;;  %621 = vmatpush.msra.mxu2 %v567_v19  ;;  %v953_v5 = vld [vmem:[%s1250_s3] ss:$0 sm:$0xff] }
  0x43   :  { %595 = vmatpush.msrb.mxu3 %v566_v20 }
  0x44   :  { %622 = vmatpush.msra.mxu2 %v566_v20 }
  0x45   :  { %596 = vmatpush.msrb.mxu3 %v565_v21 }
  0x46   :  { %623 = vmatpush.msra.mxu2 %v565_v21 }
  0x9e   :  { %v476_v22 = vpop.f32.mrf.mxu0 }
  0x9f   :  { %v490_v23 = vpop.f32.mrf.mxu1  ;;  %v477_v26 = vadd.f32 %v952_v25, %v476_v22 }
  0xa1   :  { %v491_v27 = vadd.f32 %v490_v23, %v477_v26 }
  0xa6   :  { %v504_v24 = vpop.f32.mrf.mxu2  ;;  %v478_v28 = vpop.f32.mrf.mxu0 }
  0xa7   :  { %v492_v29 = vpop.f32.mrf.mxu1  ;;  %v518_v31 = vpop.f32.mrf.mxu3  ;;  %v505_v32 = vadd.f32 %v504_v24, %v491_v27  ;;  %v479_v33 = vadd.f32 %v952_v25, %v478_v28 }
  0xa9   :  { %v519_v34 = vadd.f32 %v518_v31, %v505_v32  ;;  %v493_v35 = vadd.f32 %v492_v29, %v479_v33 }
  0xae   :  { %v506_v30 = vpop.f32.mrf.mxu2 }
  0xaf   :  { %v507_v40 = vadd.f32 %v506_v30, %v493_v35  ;;  %v520_v42 = vpop.f32.mrf.mxu3 }
  0xb1   :  { %v521_v44 = vadd.f32 %v520_v42, %v507_v40 }
  0xb6   :  { %v560_v39 = vpop.f32.mrf.mxu2 }
  0xbe   :  { %v532_v36 = vpop.f32.mrf.mxu0  ;;  %v562_v49 = vpop.f32.mrf.mxu2 }
  0xbf   :  { %v546_v37 = vpop.f32.mrf.mxu1  ;;  %v533_v38 = vadd.f32 %v532_v36, %v519_v34 }
  0xc1   :  { %v547_v41 = vadd.f32 %v546_v37, %v533_v38 }
  0xc3   :  { %v561_v43 = vadd.f32 %v560_v39, %v547_v41 }
  0xc5   :  { %597 = vmatmul.f32.vlgmr.msrb.gmra.mxu3 %v561_v43 }
  0xc6   :  { %v534_v45 = vpop.f32.mrf.mxu0 }
  0xc7   :  { %v535_v46 = vadd.f32 %v534_v45, %v521_v44  ;;  %v548_v47 = vpop.f32.mrf.mxu1 }
  0xc9   :  { %v549_v48 = vadd.f32 %v548_v47, %v535_v46 }
  0xcb   :  { %v563_v50 = vadd.f32 %v562_v49, %v549_v48 }
  0xcd   :  { %600 = vmatmul.f32.gmra.mxu3 %v563_v50 }
 0x148   :  { %v598_v51 = vpop.f32.mrf.mxu3 }
 0x149   :  { %v604_v52 = vsub.f32 %v561_v43, %v598_v51 }
 0x14b   :  { %v606_v53 = vmul.f32 %v604_v52, %v604_v52 }
 0x14d   :  { %624 = vmatmul.f32.vlgmr.msra.gmra.mxu2 %v606_v53 }
 0x150   :  { %v601_v54 = vpop.f32.mrf.mxu3 }
 0x151   :  { %v605_v55 = vsub.f32 %v563_v50, %v601_v54 }
 0x153   :  { %v607_v56 = vmul.f32 %v605_v55, %v605_v55 }
 0x155   :  { %627 = vmatmul.f32.gmra.mxu2 %v607_v56 }
 0x1d0   :  { %v625_v57 = vpop.f32.mrf.mxu2 }
 0x1d1   :  { %v626_v58 = vadd.f32 1e-05, %v625_v57 }
 0x1d3   :  { %955 = vrsqrt.f32 %v626_v58  ;;  %vm637_vm2 = vweird.f32 %v626_v58 }
 0x1d8   :  { %v628_v59 = vpop.f32.mrf.mxu2 }
 0x1d9   :  { %v956_v60 = vpop.eup %955  ;;  %v629_v61 = vadd.f32 1e-05, %v628_v59 }
 0x1da   :  { %v632_v62 = vmul.f32 %v956_v60, %v626_v58  ;;  %vm638_vm1 = vweird.f32 %v956_v60 }
 0x1db   :  { %957 = vrsqrt.f32 %v629_v61  ;;  %vm639_vm3 = vmor %vm637_vm2, %vm638_vm1  ;;  %vm647_vm5 = vweird.f32 %v629_v61 }
 0x1dc   :  { %v633_v63 = vmul.f32 %v956_v60, %v632_v62 }
 0x1de   :  { %v634_v0 = vmul.f32 0.5, %v633_v63 }
 0x1e0   :  { %v635_v1 = vsub.f32 1.5, %v634_v0 }
 0x1e1   :  { %v958_v2 = vpop.eup %957 }
 0x1e2   :  { %v636_v3 = vmul.f32 %v956_v60, %v635_v1  ;;  %v642_v4 = vmul.f32 %v958_v2, %v629_v61  ;;  %vm648_vm4 = vweird.f32 %v958_v2 }
 0x1e3   :  { %vm649_vm6 = vmor %vm647_vm5, %vm648_vm4 }
 0x1e4   :  { %v640_v6 = vsel %vm639_vm3, %v956_v60, %v636_v3  ;;  %v643_v7 = vmul.f32 %v958_v2, %v642_v4 }
 0x1e5   :  { %v651_v8 = vmul.f32 %v640_v6, %v604_v52 }
 0x1e6   :  { %v644_v10 = vmul.f32 0.5, %v643_v7 }
 0x1e7   :  { %v657_v11 = vmul.f32 %v953_v5, %v651_v8 }
 0x1e8   :  { %v645_v12 = vsub.f32 1.5, %v644_v10 }
 0x1e9   :  { %v663_v13 = vadd.f32 %v954_v9, %v657_v11 }
 0x1ea   :  { %v646_v14 = vmul.f32 %v958_v2, %v645_v12 }
 0x1eb   :  { %665 = vst [vmem:[%s1252_s6] sm:$0xff] %v663_v13 }
 0x1ec   :  { %v650_v15 = vsel %vm649_vm6, %v958_v2, %v646_v14 }
 0x1ed   :  { %v652_v16 = vmul.f32 %v650_v15, %v605_v55 }
 0x1ef   :  { %v658_v17 = vmul.f32 %v953_v5, %v652_v16 }
 0x1f1   :  { %v664_v18 = vadd.f32 %v954_v9, %v658_v17 }
 0x1f3   :  { %666 = vst [vmem:[%s1252_s6 + $0x8] sm:$0xff] %v664_v18 }

</bundles_post_ra>
